<compile_context>
chip_gen: v6e
topology: v6e:2x2x1
jax: 0.10.0
libtpu: 0.0.40
codegen_flags: <defaults>
</compile_context>

<pallas_src>
import functools
import math

import jax
import jax.numpy as jnp
from jax.experimental import pallas as pl
from jax.experimental.pallas import tpu as pltpu


def _durak_kernel(
    x_ref,               # (tile_b, F) bf16
    w1_ref, b1_ref,      # input -> 256
    w2_ref, b2_ref,      # 256 -> 128
    wh1_ref, bh1_ref,    # fused head layer 1: 128 -> 160 (= 64 + 64 + 32)
    wh2_ref, bh2_ref,    # fused block-diag head layer 2: 160 -> OUT_PAD
    out_ref,             # packed (tile_b, OUT_PAD) bf16 output: [action | card | win | 0-pad]
    *, compute_dtype,
):
    x = x_ref[...]

    # shared trunk: ReLU(ReLU(x W1 + b1) W2 + b2); f32 accumulation, bf16 operands.
    h1 = jnp.dot(x, w1_ref[...], preferred_element_type=jnp.float32) + b1_ref[...]
    h1 = jnp.maximum(h1, 0.0).astype(compute_dtype)

    shared = jnp.dot(h1, w2_ref[...], preferred_element_type=jnp.float32) + b2_ref[...]
    shared = jnp.maximum(shared, 0.0).astype(compute_dtype)

    # fused head layer 1: one MXU op producing [a1 | c1 | w1h]
    heads = jnp.dot(shared, wh1_ref[...], preferred_element_type=jnp.float32) + bh1_ref[...]
    heads = jnp.maximum(heads, 0.0).astype(compute_dtype)

    # fused block-diagonal head layer 2: one MXU op producing packed logits.
    logits = jnp.dot(heads, wh2_ref[...], preferred_element_type=jnp.float32) + bh2_ref[...]

    # Single lane-dense full-width bf16 store (sigmoid of the win lane happens in
    # the wrapper on the 1-wide slice).
    out_ref[...] = logits.astype(out_ref.dtype)


def init_params(key, input_size, action_classes, card_classes):
    """PyTorch-style Linear init: U(-1/sqrt(fan_in), 1/sqrt(fan_in)) for W and b.
    Weights stored PyTorch-style as (out_features, in_features)."""
    layer_shapes = (
        ("w1", "b1", 256, input_size),
        ("w2", "b2", 128, 256),
        ("wa1", "ba1", 64, 128),
        ("wa2", "ba2", action_classes, 64),
        ("wc1", "bc1", 64, 128),
        ("wc2", "bc2", card_classes, 64),
        ("ww1", "bw1", 32, 128),
        ("ww2", "bw2", 1, 32),
    )
    params = {}
    keys = jax.random.split(key, 2 * len(layer_shapes))
    for idx, (wname, bname, out_f, in_f) in enumerate(layer_shapes):
        bound = 1.0 / math.sqrt(in_f)
        params[wname] = jax.random.uniform(
            keys[2 * idx], (out_f, in_f), dtype=jnp.float32, minval=-bound, maxval=bound
        )
        params[bname] = jax.random.uniform(
            keys[2 * idx + 1], (out_f,), dtype=jnp.float32, minval=-bound, maxval=bound
        )
    return params


def prepare_params(params, compute_dtype=jnp.bfloat16):
    """One-time layout prep (call once, reuse for every forward):
    - transpose (out,in) -> (in,out) so kernel dots are x @ W
    - fuse head layer-1 weights along the output dim (128, 160)
    - build block-diagonal fused head layer-2 weight padded to 128 output lanes
    - cast weights to compute_dtype (bf16), keep biases f32."""
    A = params["wa2"].shape[0]
    C = params["wc2"].shape[0]
    out_dim = A + C + 1
    out_pad = max(128, ((out_dim + 127) // 128) * 128)

    def wt(name):
        return jnp.transpose(params[name]).astype(compute_dtype)

    def bt(name):
        return params[name].reshape(1, -1).astype(jnp.float32)

    # Fused head layer 1: [action | card | win] along output dim.
    wh1 = jnp.concatenate([wt("wa1"), wt("wc1"), wt("ww1")], axis=1)
    bh1 = jnp.concatenate([bt("ba1"), bt("bc1"), bt("bw1")], axis=1)

    # Fused head layer 2: block diagonal, padded to out_pad lanes (pad cols = 0).
    ha = params["wa1"].shape[0]
    hc = params["wc1"].shape[0]
    hw = params["ww1"].shape[0]
    h_total = ha + hc + hw
    wh2 = jnp.zeros((h_total, out_pad), dtype=jnp.float32)
    bh2 = jnp.zeros((1, out_pad), dtype=jnp.float32)
    row, col = 0, 0
    for wname, bname, h, o in (
        ("wa2", "ba2", ha, A),
        ("wc2", "bc2", hc, C),
        ("ww2", "bw2", hw, 1),
    ):
        wh2 = wh2.at[row:row + h, col:col + o].set(jnp.transpose(params[wname]))
        bh2 = bh2.at[0, col:col + o].set(params[bname])
        row += h
        col += o
    wh2 = wh2.astype(compute_dtype)

    return dict(
        w1=wt("w1"), b1=bt("b1"),
        w2=wt("w2"), b2=bt("b2"),
        wh1=wh1, bh1=bh1, wh2=wh2, bh2=bh2,
        action_classes=A, card_classes=C,
        out_pad=out_pad, compute_dtype=compute_dtype,
    )


def _choose_tile(B, F, out_pad):
    """Pick the batch tile: big enough to amortize the ~0.35 us/step grid overhead,
    small enough to stay well under v5e's 16 MiB default scoped VMEM (double-buffered
    bf16 x + bf16 out blocks), and an even step count for B > 512 so both v7x
    TensorCores get work under dimension_semantics=("parallel",)."""
    row_bytes = 2 * F + 2 * out_pad               # bf16 x + bf16 packed out, per row
    vmem_budget = 12 * 1024 * 1024                # conservative vs v5e 16 MiB default
    max_tile = vmem_budget // (2 * row_bytes)     # x/out blocks are double-buffered
    max_tile = max(512, min(4096, (max_tile // 8) * 8))
    if B <= 512:
        return B                                  # small batch: single step, no pipeline
    n_steps = 2 * pl.cdiv(B, 2 * max_tile)        # even number of grid steps
    tile = pl.cdiv(B, n_steps)
    return min(B, ((tile + 7) // 8) * 8)          # sublane-aligned tile rows


def durak_forward_packed(x, prepped):
    """Runs the fused kernel; returns the packed bf16 (B, out_pad) logits slab
    [action | card | win | zero-pad] with NO sigmoid applied."""
    B, F = x.shape
    out_pad = prepped["out_pad"]
    compute_dtype = prepped["compute_dtype"]

    # bf16 input path: halves the x DMA, MXU is bf16-native on v5e/v6e/v7x.
    x_in = x if x.dtype == compute_dtype else x.astype(compute_dtype)

    w_args = (
        prepped["w1"], prepped["b1"], prepped["w2"], prepped["b2"],
        prepped["wh1"], prepped["bh1"], prepped["wh2"], prepped["bh2"],
    )

    tile_b = _choose_tile(B, F, out_pad)
    grid = (pl.cdiv(B, tile_b),)

    x_spec = pl.BlockSpec((tile_b, F), lambda i: (i, 0))
    out_spec = pl.BlockSpec((tile_b, out_pad), lambda i: (i, 0))
    # Weights/biases: same (whole-array) block every grid step -> stay VMEM-resident.
    w_specs = [pl.BlockSpec(w.shape, lambda i: (0, 0)) for w in w_args]

    hidden1 = prepped["w1"].shape[1]
    hidden2 = prepped["w2"].shape[1]
    h_total = prepped["wh1"].shape[1]
    out_dim = prepped["action_classes"] + prepped["card_classes"] + 1
    flops = 2 * B * (F * hidden1 + hidden1 * hidden2 + hidden2 * h_total + h_total * out_dim)
    weight_bytes = sum(int(w.size) * w.dtype.itemsize for w in w_args)
    cost = pl.CostEstimate(
        flops=int(flops),
        transcendentals=0,  # sigmoid moved to the wrapper (1-wide slice only)
        bytes_accessed=int(B * F * 2) + weight_bytes + int(B * out_pad * 2),
    )

    kernel = functools.partial(_durak_kernel, compute_dtype=compute_dtype)

    return pl.pallas_call(
        kernel,
        out_shape=jax.ShapeDtypeStruct((B, out_pad), compute_dtype),
        grid=grid,
        in_specs=[x_spec] + w_specs,
        out_specs=out_spec,
        compiler_params=pltpu.CompilerParams(dimension_semantics=("parallel",)),
        cost_estimate=cost,
    )(x_in, *w_args)


def durak_forward(x, prepped):
    """Matches DurakModel.forward: (action_logits, card_logits, win_prob).
    Call under jax.jit so the slab slicing / sigmoid / f32 casts fuse with the
    surrounding graph instead of re-reading the packed slab from HBM."""
    A = prepped["action_classes"]
    C = prepped["card_classes"]
    packed = durak_forward_packed(x, prepped)
    action_logits = packed[:, :A].astype(jnp.float32)
    card_logits = packed[:, A:A + C].astype(jnp.float32)
    win_prob = jax.nn.sigmoid(packed[:, A + C:A + C + 1].astype(jnp.float32))
    return action_logits, card_logits, win_prob


def durak_forward_ref(x, params):
    """Pure-JAX f32 reference matching the PyTorch module."""
    def lin(v, w, b):
        return v @ w.T + b

    shared = jnp.maximum(
        lin(jnp.maximum(lin(x, params["w1"], params["b1"]), 0.0), params["w2"], params["b2"]), 0.0
    )
    a = lin(jnp.maximum(lin(shared, params["wa1"], params["ba1"]), 0.0), params["wa2"], params["ba2"])
    c = lin(jnp.maximum(lin(shared, params["wc1"], params["bc1"]), 0.0), params["wc2"], params["bc2"])
    w = jax.nn.sigmoid(
        lin(jnp.maximum(lin(shared, params["ww1"], params["bw1"]), 0.0), params["ww2"], params["bw2"])
    )
    return a, c, w


if __name__ == "__main__":
    key = jax.random.PRNGKey(0)
    k_params, k_x = jax.random.split(key)

    batch = 8
    input_size = 32
    action_classes = 8
    card_classes = 16

    params = init_params(k_params, input_size, action_classes, card_classes)
    prepped = prepare_params(params, compute_dtype=jnp.bfloat16)  # one-time layout prep
    x = jax.random.normal(k_x, (batch, input_size), dtype=jnp.float32)

    # Jit the wrapper so the slab slicing + sigmoid + f32 casts fuse around the kernel.
    fwd = jax.jit(functools.partial(durak_forward, prepped=prepped))
    action_logits, card_logits, win_prob = fwd(x)
    jax.block_until_ready((action_logits, card_logits, win_prob))

    assert action_logits.shape == (batch, action_classes)
    assert card_logits.shape == (batch, card_classes)
    assert win_prob.shape == (batch, 1)
    assert bool(jnp.all((win_prob >= 0.0) & (win_prob <= 1.0)))

    # Numerics vs f32 reference (loose tolerance: kernel uses bf16 weights/activations
    # and a bf16 packed output slab).
    a_ref, c_ref, w_ref = durak_forward_ref(x, params)
    assert bool(jnp.allclose(action_logits, a_ref, atol=0.1, rtol=0.1))
    assert bool(jnp.allclose(card_logits, c_ref, atol=0.1, rtol=0.1))
    assert bool(jnp.allclose(win_prob, w_ref, atol=0.05, rtol=0.05))

    print("KERNEL_OK")
</pallas_src>

<mosaic_0001>
module attributes {stable_mosaic.version = 11 : i64} {
  func.func @_durak_kernel(%arg0: i32, %arg1: memref<8x32xbf16, #tpu.memory_space<vmem>>, %arg2: memref<32x256xbf16, #tpu.memory_space<vmem>>, %arg3: memref<1x256xf32, #tpu.memory_space<vmem>>, %arg4: memref<256x128xbf16, #tpu.memory_space<vmem>>, %arg5: memref<1x128xf32, #tpu.memory_space<vmem>>, %arg6: memref<128x160xbf16, #tpu.memory_space<vmem>>, %arg7: memref<1x160xf32, #tpu.memory_space<vmem>>, %arg8: memref<160x128xbf16, #tpu.memory_space<vmem>>, %arg9: memref<1x128xf32, #tpu.memory_space<vmem>>, %arg10: memref<8x128xbf16, #tpu.memory_space<vmem>>) attributes {dimension_semantics = [#tpu.dimension_semantics<parallel>], iteration_bounds = array<i64: 1>, scalar_prefetch = 0 : i64, scratch_operands = 0 : i64, tpu.core_type = #tpu.core_type<tc>, window_params = [{transform_indices = @transform_0, window_bounds = array<i64: 8, 32>}, {pipeline_mode = #tpu.pipeline_mode<synchronous>, transform_indices = @transform_1, window_bounds = array<i64: 32, 256>}, {pipeline_mode = #tpu.pipeline_mode<synchronous>, transform_indices = @transform_2, window_bounds = array<i64: 1, 256>}, {pipeline_mode = #tpu.pipeline_mode<synchronous>, transform_indices = @transform_3, window_bounds = array<i64: 256, 128>}, {pipeline_mode = #tpu.pipeline_mode<synchronous>, transform_indices = @transform_4, window_bounds = array<i64: 1, 128>}, {pipeline_mode = #tpu.pipeline_mode<synchronous>, transform_indices = @transform_5, window_bounds = array<i64: 128, 160>}, {pipeline_mode = #tpu.pipeline_mode<synchronous>, transform_indices = @transform_6, window_bounds = array<i64: 1, 160>}, {pipeline_mode = #tpu.pipeline_mode<synchronous>, transform_indices = @transform_7, window_bounds = array<i64: 160, 128>}, {pipeline_mode = #tpu.pipeline_mode<synchronous>, transform_indices = @transform_8, window_bounds = array<i64: 1, 128>}, {transform_indices = @transform_9, window_bounds = array<i64: 8, 128>}]} {
    %c0 = arith.constant 0 : index
    %c0_0 = arith.constant 0 : index
    %0 = vector.load %arg1[%c0, %c0_0] : memref<8x32xbf16, #tpu.memory_space<vmem>>, vector<8x32xbf16>
    %c0_1 = arith.constant 0 : index
    %c0_2 = arith.constant 0 : index
    %1 = vector.load %arg2[%c0_1, %c0_2] : memref<32x256xbf16, #tpu.memory_space<vmem>>, vector<32x256xbf16>
    %cst = arith.constant dense<0.000000e+00> : vector<8x256xf32>
    %2 = tpu.matmul %0, %1, %cst {dimension_numbers = #tpu.dot_dimension_numbers<[1], [0], [0], [1], [0, 0, 1, 1], [], []>} : vector<8x32xbf16>, vector<32x256xbf16>, vector<8x256xf32> -> vector<8x256xf32>
    %c0_3 = arith.constant 0 : index
    %c0_4 = arith.constant 0 : index
    %3 = vector.load %arg3[%c0_3, %c0_4] : memref<1x256xf32, #tpu.memory_space<vmem>>, vector<1x256xf32>
    %4 = vector.broadcast %3 : vector<1x256xf32> to vector<8x256xf32>
    %5 = arith.addf %2, %4 : vector<8x256xf32>
    %cst_5 = arith.constant 0.000000e+00 : f32
    %6 = vector.broadcast %cst_5 : f32 to vector<8x256xf32>
    %7 = arith.maximumf %5, %6 : vector<8x256xf32>
    %8 = arith.truncf %7 : vector<8x256xf32> to vector<8x256xbf16>
    %c0_6 = arith.constant 0 : index
    %c0_7 = arith.constant 0 : index
    %9 = vector.load %arg4[%c0_6, %c0_7] : memref<256x128xbf16, #tpu.memory_space<vmem>>, vector<256x128xbf16>
    %cst_8 = arith.constant dense<0.000000e+00> : vector<8x128xf32>
    %10 = tpu.matmul %8, %9, %cst_8 {dimension_numbers = #tpu.dot_dimension_numbers<[1], [0], [0], [1], [0, 0, 1, 1], [], []>} : vector<8x256xbf16>, vector<256x128xbf16>, vector<8x128xf32> -> vector<8x128xf32>
    %c0_9 = arith.constant 0 : index
    %c0_10 = arith.constant 0 : index
    %11 = vector.load %arg5[%c0_9, %c0_10] : memref<1x128xf32, #tpu.memory_space<vmem>>, vector<1x128xf32>
    %12 = vector.broadcast %11 : vector<1x128xf32> to vector<8x128xf32>
    %13 = arith.addf %10, %12 : vector<8x128xf32>
    %cst_11 = arith.constant 0.000000e+00 : f32
    %14 = vector.broadcast %cst_11 : f32 to vector<8x128xf32>
    %15 = arith.maximumf %13, %14 : vector<8x128xf32>
    %16 = arith.truncf %15 : vector<8x128xf32> to vector<8x128xbf16>
    %c0_12 = arith.constant 0 : index
    %c0_13 = arith.constant 0 : index
    %17 = vector.load %arg6[%c0_12, %c0_13] : memref<128x160xbf16, #tpu.memory_space<vmem>>, vector<128x160xbf16>
    %cst_14 = arith.constant dense<0.000000e+00> : vector<8x160xf32>
    %18 = tpu.matmul %16, %17, %cst_14 {dimension_numbers = #tpu.dot_dimension_numbers<[1], [0], [0], [1], [0, 0, 1, 1], [], []>} : vector<8x128xbf16>, vector<128x160xbf16>, vector<8x160xf32> -> vector<8x160xf32>
    %c0_15 = arith.constant 0 : index
    %c0_16 = arith.constant 0 : index
    %19 = vector.load %arg7[%c0_15, %c0_16] : memref<1x160xf32, #tpu.memory_space<vmem>>, vector<1x160xf32>
    %20 = vector.broadcast %19 : vector<1x160xf32> to vector<8x160xf32>
    %21 = arith.addf %18, %20 : vector<8x160xf32>
    %cst_17 = arith.constant 0.000000e+00 : f32
    %22 = vector.broadcast %cst_17 : f32 to vector<8x160xf32>
    %23 = arith.maximumf %21, %22 : vector<8x160xf32>
    %24 = arith.truncf %23 : vector<8x160xf32> to vector<8x160xbf16>
    %c0_18 = arith.constant 0 : index
    %c0_19 = arith.constant 0 : index
    %25 = vector.load %arg8[%c0_18, %c0_19] : memref<160x128xbf16, #tpu.memory_space<vmem>>, vector<160x128xbf16>
    %cst_20 = arith.constant dense<0.000000e+00> : vector<8x128xf32>
    %26 = tpu.matmul %24, %25, %cst_20 {dimension_numbers = #tpu.dot_dimension_numbers<[1], [0], [0], [1], [0, 0, 1, 1], [], []>} : vector<8x160xbf16>, vector<160x128xbf16>, vector<8x128xf32> -> vector<8x128xf32>
    %c0_21 = arith.constant 0 : index
    %c0_22 = arith.constant 0 : index
    %27 = vector.load %arg9[%c0_21, %c0_22] : memref<1x128xf32, #tpu.memory_space<vmem>>, vector<1x128xf32>
    %28 = vector.broadcast %27 : vector<1x128xf32> to vector<8x128xf32>
    %29 = arith.addf %26, %28 : vector<8x128xf32>
    %30 = arith.truncf %29 : vector<8x128xf32> to vector<8x128xbf16>
    %c0_23 = arith.constant 0 : index
    %c0_24 = arith.constant 0 : index
    %31 = vector.load %arg10[%c0_23, %c0_24] : memref<8x128xbf16, #tpu.memory_space<vmem>>, vector<8x128xbf16>
    tpu.vector_store %arg10[%c0_23, %c0_24], %30 {strides = array<i32>} : memref<8x128xbf16, #tpu.memory_space<vmem>>, vector<8x128xbf16>,
    return
  }
  func.func @transform_0(%arg0: i32) -> (i32, i32) {
    %c0_i32 = arith.constant 0 : i32
    %c0_i32_0 = arith.constant 0 : i32
    return %arg0, %c0_i32 : i32, i32
  }
  func.func @transform_1(%arg0: i32) -> (i32, i32) {
    %c0_i32 = arith.constant 0 : i32
    %c0_i32_0 = arith.constant 0 : i32
    %c0_i32_1 = arith.constant 0 : i32
    return %c0_i32, %c0_i32_0 : i32, i32
  }
  func.func @transform_2(%arg0: i32) -> (i32, i32) {
    %c0_i32 = arith.constant 0 : i32
    %c0_i32_0 = arith.constant 0 : i32
    %c0_i32_1 = arith.constant 0 : i32
    return %c0_i32, %c0_i32_0 : i32, i32
  }
  func.func @transform_3(%arg0: i32) -> (i32, i32) {
    %c0_i32 = arith.constant 0 : i32
    %c0_i32_0 = arith.constant 0 : i32
    %c0_i32_1 = arith.constant 0 : i32
    return %c0_i32, %c0_i32_0 : i32, i32
  }
  func.func @transform_4(%arg0: i32) -> (i32, i32) {
    %c0_i32 = arith.constant 0 : i32
    %c0_i32_0 = arith.constant 0 : i32
    %c0_i32_1 = arith.constant 0 : i32
    return %c0_i32, %c0_i32_0 : i32, i32
  }
  func.func @transform_5(%arg0: i32) -> (i32, i32) {
    %c0_i32 = arith.constant 0 : i32
    %c0_i32_0 = arith.constant 0 : i32
    %c0_i32_1 = arith.constant 0 : i32
    return %c0_i32, %c0_i32_0 : i32, i32
  }
  func.func @transform_6(%arg0: i32) -> (i32, i32) {
    %c0_i32 = arith.constant 0 : i32
    %c0_i32_0 = arith.constant 0 : i32
    %c0_i32_1 = arith.constant 0 : i32
    return %c0_i32, %c0_i32_0 : i32, i32
  }
  func.func @transform_7(%arg0: i32) -> (i32, i32) {
    %c0_i32 = arith.constant 0 : i32
    %c0_i32_0 = arith.constant 0 : i32
    %c0_i32_1 = arith.constant 0 : i32
    return %c0_i32, %c0_i32_0 : i32, i32
  }
  func.func @transform_8(%arg0: i32) -> (i32, i32) {
    %c0_i32 = arith.constant 0 : i32
    %c0_i32_0 = arith.constant 0 : i32
    %c0_i32_1 = arith.constant 0 : i32
    return %c0_i32, %c0_i32_0 : i32, i32
  }
  func.func @transform_9(%arg0: i32) -> (i32, i32) {
    %c0_i32 = arith.constant 0 : i32
    %c0_i32_0 = arith.constant 0 : i32
    return %arg0, %c0_i32 : i32, i32
  }
}

</mosaic_0001>

<bundles_post_ra>
// kernel: durak_forward.1
= control target key start
LH: loop header
LB: loop body
LE: loop exit
PB: predicated region body
PF: predicated region fallthrough
CT: control target
= control target key end

     0   :  { %14 = vsyncpa [#allocation3], 0  ;;  %s987_s0 = inlined_call_operand.vmem [shape: bf16[8,32], index: 0, kind: input, shape index: {}]   ;;  %s988_s1 = inlined_call_operand.hbm [shape: bf16[32,256], index: 1, kind: input, shape index: {}]   ;;  %s989_s2 = inlined_call_operand.vmem [shape: f32[1,256], index: 2, kind: input, shape index: {}]   ;;  %s990_s3 = inlined_call_operand.hbm [shape: bf16[256,128], index: 3, kind: input, shape index: {}]   ;;  %s991_s4 = inlined_call_operand.vmem [shape: f32[1,128], index: 4, kind: input, shape index: {}]   ;;  %s992_s5 = inlined_call_operand.hbm [shape: bf16[128,160], index: 5, kind: input, shape index: {}]   ;;  %s993_s6 = inlined_call_operand.vmem [shape: f32[1,160], index: 6, kind: input, shape index: {}]   ;;  %s994_s7 = inlined_call_operand.hbm [shape: bf16[160,128], index: 7, kind: input, shape index: {}]   ;;  %s995_s8 = inlined_call_operand.vmem [shape: f32[1,128], index: 8, kind: input, shape index: {}]   ;;  %s996_s9 = inlined_call_operand.vmem [shape: bf16[8,128], index: 9, kind: output, shape index: {}]  }
   0x1   :  { %15 = vsyncpa [#allocation5], 0 }
   0x2   :  { %16 = vsyncpa [#allocation8], 0  ;;  %s866_s30 = smov [#allocation4]  }
   0x3   :  { %s38_s10 = sshll.u32 %s866_s30, 4  ;;  %s39_s10 = int_to_ptr.vmem [resolvable:$true] %s38_s10 }
   0x4   :  { %s788_s11 = scalar_lea.vmem %s39_s10, 2048  ;;  %p793_p1 = scmp.lt.s32.totalorder %s39_s10, %s39_s10 }
   0x5   :  { %p789_p0 = scmp.ne.s32.totalorder %s39_s10, %s788_s11  ;;  %p794_p2 = scmp.lt.s32.totalorder %s788_s11, %s788_s11 }
   0x7   :  { %p795_p3 = por %p794_p2, %p793_p1 }
   0x9   :  { %p796_p4 = pnand %p795_p3, %p789_p0 }
   0xb   :  { %799 = shalt.err (!%p796_p4)
}
   0xc   :  { %s867_s12 = smov 64   ;;  %s868_s13 = smov 4  }
   0xd   :  { %44 = dma.hbm_to_vmem [thread:$0]  %s990_s3, 2048, %s39_s10, [#allocation5], %s867_s12, %s867_s12, %s868_s13  }
   0xe   :  { %s869_s16 = smov [#allocation2]  }
   0xf   :  { %s24_s17 = sshll.u32 %s869_s16, 4  ;;  %s25_s17 = int_to_ptr.vmem [resolvable:$true] %s24_s17 }
  0x10   :  { %s808_s18 = scalar_lea.vmem %s25_s17, 512  ;;  %p813_p6 = scmp.lt.s32.totalorder %s25_s17, %s25_s17 }
  0x11   :  { %p809_p5 = scmp.ne.s32.totalorder %s25_s17, %s808_s18  ;;  %p814_p7 = scmp.lt.s32.totalorder %s808_s18, %s808_s18 }
  0x13   :  { %p815_p8 = por %p814_p7, %p813_p6 }
  0x15   :  { %p816_p9 = pnand %p815_p8, %p809_p5 }
  0x17   :  { %819 = shalt.err (!%p816_p9)
}
  0x18   :  { %s870_s19 = smov 128   ;;  %s871_s20 = smov 8  }
  0x19   :  { %30 = dma.hbm_to_vmem [thread:$0]  %s988_s1, 512, %s25_s17, [#allocation3], %s870_s19, %s870_s19, %s871_s20  }
  0x1a   :  { %s872_s23 = smov [#allocation6]   ;;  %s873_s25 = smov [#allocation7]  }
  0x1b   :  { %s52_s24 = sshll.u32 %s872_s23, 4  ;;  %s66_s3 = sshll.u32 %s873_s25, 4  ;;  %s53_s24 = int_to_ptr.vmem [resolvable:$true] %s52_s24  ;;  %s67_s3 = int_to_ptr.vmem [resolvable:$true] %s66_s3 }
  0x1c   :  { %s828_s26 = scalar_lea.vmem %s53_s24, 2048  ;;  %p833_p11 = scmp.lt.s32.totalorder %s53_s24, %s53_s24 }
  0x1d   :  { %p829_p10 = scmp.ne.s32.totalorder %s53_s24, %s828_s26  ;;  %p834_p12 = scmp.lt.s32.totalorder %s828_s26, %s828_s26 }
  0x1f   :  { %p835_p13 = por %p834_p12, %p833_p11 }
  0x21   :  { %p836_p0 = pnand %p835_p13, %p829_p10 }
  0x23   :  { %839 = shalt.err (!%p836_p0)
}
  0x24   :  { %58 = dma.hbm_to_vmem [thread:$0]  %s992_s5, 2048, %s53_s24, [#allocation5], %s870_s19, %s870_s19, %s871_s20  }
  0x25   :  { %s848_s29 = scalar_lea.vmem %s67_s3, 1280  ;;  %p853_p2 = scmp.lt.s32.totalorder %s67_s3, %s67_s3 }
  0x26   :  { %p849_p1 = scmp.ne.s32.totalorder %s67_s3, %s848_s29  ;;  %p854_p3 = scmp.lt.s32.totalorder %s848_s29, %s848_s29 }
  0x28   :  { %p855_p4 = por %p854_p3, %p853_p2 }
  0x2a   :  { %p856_p5 = pnand %p855_p4, %p849_p1 }
  0x2c   :  { %859 = shalt.err (!%p856_p5)
}
  0x2d   :  { %72 = dma.hbm_to_vmem [thread:$0]  %s994_s7, 1280, %s67_s3, [#allocation8], %s867_s12, %s867_s12, %s868_s13  }
  0x2e   :  { %860 = dma.done.wait [#allocation3], 512  }
  0x2f   :  { %861 = vsyncadd [#allocation3], 4294966784 }
  0x30   :  { %862 = dma.done.wait [#allocation5], 4096  }
  0x31   :  { %863 = vsyncadd [#allocation5], 4294963200 }
  0x32   :  { %864 = dma.done.wait [#allocation8], 1280  }
  0x33   :  { %865 = vsyncadd [#allocation8], 4294966016  ;;  %v874_v0 = vmov 0   ;;  %v724_v1 = vld [vmem:[#allocation2 + $0x14] ss:$8 sps:$4 sm:$0xff]   ;;  %vm125_vm0 = vcmask 261120   ;;  %v95_v34 = vlaneseq }
  0x34   :  { %161 = vmatprep.mubr.bf16.mxu0 %v874_v0  ;;  %v726_v2 = vld [vmem:[#allocation2 + $0x10] ss:$8 sps:$4 sm:$0xff]   ;;  %141 = vmatprep.subr.bf16.mxu0 %v724_v1  ;;  %v727_v3 = vld [vmem:[#allocation2 + $0x4] ss:$8 sps:$4 sm:$0xff]   ;;  %v729_v4 = vld [vmem:[#allocation2] ss:$8 sps:$4 sm:$0xff]  }
  0x35   :  { %142 = vmatpush1.bf16.msra.mxu0 %v726_v2  ;;  %v730_v5 = vld [vmem:[#allocation4 + $0x78] sm:$0xff]   ;;  %v88_v7 = vld [vmem:[%s987_s0] sm:$0xf]  ;;  %v732_v8 = vld [vmem:[#allocation4 + $0x70] sm:$0xff]   ;;  %v950_v35 = vshrl.u32 %v95_v34, 7 }
  0x36   :  { %143 = vmatprep.subr.bf16.mxu0 %v727_v3  ;;  %v731_v6 = vld [vmem:[#allocation4 + $0x38] sm:$0xff]   ;;  %693 = vmatprep.subr.bf16.mxu1 %v730_v5  ;;  %v733_v9 = vld [vmem:[#allocation4 + $0x30] sm:$0xff]   ;;  %v734_v10 = vld [vmem:[#allocation4 + $0x68] sm:$0xff]  }
  0x37   :  { %694 = vmatpush3.bf16.msra.mxu1 %v731_v6  ;;  %v735_v11 = vld [vmem:[#allocation4 + $0x28] sm:$0xff]   ;;  %v736_v12 = vld [vmem:[#allocation4 + $0x60] sm:$0xff]   ;;  %v738_v14 = vld [vmem:[#allocation4 + $0x58] sm:$0xff]   ;;  %v97_v36 = vsub.s32 0, %v950_v35  ;;  %v101_v38 = vsub.s32 1, %v950_v35 }
  0x38   :  { %695 = vmatprep.subr.bf16.mxu1 %v732_v8  ;;  %v737_v13 = vld [vmem:[#allocation4 + $0x20] sm:$0xff]   ;;  %v739_v15 = vld [vmem:[#allocation4 + $0x18] sm:$0xff]   ;;  %v740_v16 = vld [vmem:[#allocation4 + $0x50] sm:$0xff]  }
  0x39   :  { %144 = vmatpush1.bf16.msra.mxu0 %v729_v4  ;;  %v741_v17 = vld [vmem:[#allocation4 + $0x10] sm:$0xff]   ;;  %v742_v18 = vld [vmem:[#allocation4 + $0x48] sm:$0xff]   ;;  %v744_v20 = vld [vmem:[#allocation4 + $0x40] sm:$0xff]  }
  0x3a   :  { %v743_v19 = vld [vmem:[#allocation4 + $0x8] sm:$0xff]   ;;  %v745_v21 = vld [vmem:[#allocation4] sm:$0xff]   ;;  %v746_v22 = vld [vmem:[#allocation6 + $0x70] ss:$8 sps:$4 sm:$0xff]  }
  0x3b   :  { %696 = vmatpush3.bf16.msra.mxu1 %v733_v9  ;;  %v748_v23 = vld [vmem:[#allocation6 + $0x74] ss:$8 sps:$4 sm:$0xff]   ;;  %v751_v24 = vld [vmem:[#allocation6 + $0x64] ss:$8 sps:$4 sm:$0xff]   ;;  %v749_v25 = vld [vmem:[#allocation6 + $0x60] ss:$8 sps:$4 sm:$0xff]  }
  0x3c   :  { %647 = vmatmul.mubr.msk.bf16.vlgmr.msra.gmra.mxu0 %vm125_vm0, %v88_v7  ;;  %697 = vmatprep.subr.bf16.mxu1 %v734_v10  ;;  %v754_v26 = vld [vmem:[#allocation6 + $0x54] ss:$8 sps:$4 sm:$0xff]   ;;  %v752_v27 = vld [vmem:[#allocation6 + $0x50] ss:$8 sps:$4 sm:$0xff]   ;;  %v757_v28 = vld [vmem:[#allocation6 + $0x44] ss:$8 sps:$4 sm:$0xff]  }
  0x3d   :  { %491 = vmatprep.mubr.bf16.mxu0 %v874_v0  ;;  %459 = vmatprep.subr.bf16.mxu0 %v748_v23  ;;  %v755_v29 = vld [vmem:[#allocation6 + $0x40] ss:$8 sps:$4 sm:$0xff]   ;;  %v760_v30 = vld [vmem:[#allocation6 + $0x34] ss:$8 sps:$4 sm:$0xff]   ;;  %v758_v31 = vld [vmem:[#allocation6 + $0x30] ss:$8 sps:$4 sm:$0xff]  }
  0x3e   :  { %460 = vmatpush1.bf16.msra.mxu0 %v746_v22  ;;  %v763_v32 = vld [vmem:[#allocation6 + $0x24] ss:$8 sps:$4 sm:$0xff]   ;;  %v761_v33 = vld [vmem:[#allocation6 + $0x20] ss:$8 sps:$4 sm:$0xff]   ;;  %v766_v51 = vld [vmem:[#allocation6 + $0x14] ss:$8 sps:$4 sm:$0xff]  }
  0x3f   :  { %698 = vmatpush3.bf16.msra.mxu1 %v735_v11  ;;  %461 = vmatprep.subr.bf16.mxu0 %v751_v24  ;;  %v93_v37 = vld [vmem:[%s989_s2] sm:$0x3]  ;;  %v764_v52 = vld [vmem:[#allocation6 + $0x10] ss:$8 sps:$4 sm:$0xff]   ;;  %v769_v53 = vld [vmem:[#allocation6 + $0x4] ss:$8 sps:$4 sm:$0xff]  }
  0x40   :  { %699 = vmatprep.subr.bf16.mxu1 %v736_v12  ;;  %v98_v39 = vrot.slane %v93_v37, %v97_v36  ;;  %v102_v40 = vrot.slane %v93_v37, %v101_v38  ;;  %v767_v54 = vld [vmem:[#allocation6] ss:$8 sps:$4 sm:$0xff]   ;;  %v770_v55 = vld [vmem:[#allocation7 + $0x38] sm:$0xff]   ;;  %v771_v56 = vld [vmem:[#allocation7 + $0x30] sm:$0xff]  }
  0x41   :  { %v772_v57 = vld [vmem:[#allocation7 + $0x28] sm:$0xff]   ;;  %v773_v58 = vld [vmem:[#allocation7 + $0x20] sm:$0xff]   ;;  %v774_v59 = vld [vmem:[#allocation7 + $0x18] sm:$0xff]  }
  0x42   :  { %462 = vmatpush1.bf16.msra.mxu0 %v749_v25  ;;  %v775_v60 = vld [vmem:[#allocation7 + $0x10] sm:$0xff]   ;;  %v776_v61 = vld [vmem:[#allocation7 + $0x8] sm:$0xff]   ;;  %v777_v62 = vld [vmem:[#allocation7] sm:$0xff]  }
  0x43   :  { %700 = vmatpush3.bf16.msra.mxu1 %v737_v13  ;;  %463 = vmatprep.subr.bf16.mxu0 %v754_v26  ;;  %v648_v1 = vld [vmem:[%s991_s4] ss:$0 sm:$0xff]  ;;  %v778_v9 = vld [vmem:[#allocation7 + $0x48] sm:$0xff]  }
  0x44   :  { %701 = vmatprep.subr.bf16.mxu1 %v738_v14  ;;  %v779_v10 = vld [vmem:[#allocation7 + $0x40] sm:$0xff]  }
  0x45   :  { %v367_v11 = vld [vmem:[%s993_s6] sm:$0x3] }
  0x46   :  { %464 = vmatpush1.bf16.msra.mxu0 %v752_v27  ;;  %v372_v12 = vrot.slane %v367_v11, %v97_v36  ;;  %v376_v13 = vrot.slane %v367_v11, %v101_v38  ;;  %v681_v23 = vld [vmem:[%s995_s8] ss:$0 sm:$0xff] }
  0x47   :  { %702 = vmatpush3.bf16.msra.mxu1 %v739_v15  ;;  %465 = vmatprep.subr.bf16.mxu0 %v757_v28 }
  0x48   :  { %703 = vmatprep.subr.bf16.mxu1 %v740_v16 }
  0x4a   :  { %466 = vmatpush1.bf16.msra.mxu0 %v755_v29 }
  0x4b   :  { %704 = vmatpush3.bf16.msra.mxu1 %v741_v17  ;;  %467 = vmatprep.subr.bf16.mxu0 %v760_v30 }
  0x4c   :  { %705 = vmatprep.subr.bf16.mxu1 %v742_v18 }
  0x4e   :  { %468 = vmatpush1.bf16.msra.mxu0 %v758_v31 }
  0x4f   :  { %706 = vmatpush3.bf16.msra.mxu1 %v743_v19  ;;  %469 = vmatprep.subr.bf16.mxu0 %v763_v32 }
  0x50   :  { %707 = vmatprep.subr.bf16.mxu1 %v744_v20 }
  0x52   :  { %470 = vmatpush1.bf16.msra.mxu0 %v761_v33 }
  0x53   :  { %708 = vmatpush3.bf16.msra.mxu1 %v745_v21  ;;  %471 = vmatprep.subr.bf16.mxu0 %v766_v51 }
  0x54   :  { %594 = vmatprep.subr.bf16.mxu1 %v874_v0 }
  0x56   :  { %472 = vmatpush1.bf16.msra.mxu0 %v764_v52 }
  0x57   :  { %473 = vmatprep.subr.bf16.mxu0 %v769_v53 }
  0x5a   :  { %474 = vmatpush1.bf16.msra.mxu0 %v767_v54 }
  0xfc   :  { %v163_v41 = vpop.f32.mrf.mxu0 }
  0xfd   :  { %v164_v42 = vadd.f32 %v163_v41, %v98_v39 }
  0xfe   :  { %v165_v43 = vpop.f32.mrf.mxu0 }
  0xff   :  { %v166_v44 = vadd.f32 %v165_v43, %v102_v40  ;;  %v170_v45 = vmax.f32 %v164_v42, 0.0 }
 0x100   :  { %v167_v46 = vpop.f32.mrf.mxu0 }
 0x101   :  { %v171_v47 = vmax.f32 %v166_v44, 0.0  ;;  %v172_v50 = vpack.c.bf16 %v170_v45, %v170_v45 }
 0x102   :  { %v168_v48 = vpop.f32.mrf.mxu0 }
 0x103   :  { %v173_v49 = vpack.c.bf16 %v171_v47, %v171_v47 }
 0x105   :  { %341 = vmatprep.mubr.bf16.mxu1 %v173_v49 }
 0x106   :  { %342 = vmatmul.mubr.bf16.vlgmr.msra.gmra.mxu1 %v172_v50 }
 0x107   :  { %595 = vmatpush1.bf16.msra.mxu1 %v770_v55 }
 0x108   :  { %596 = vmatprep.subr.bf16.mxu1 %v874_v0 }
 0x10b   :  { %597 = vmatpush1.bf16.msra.mxu1 %v771_v56 }
 0x10c   :  { %598 = vmatprep.subr.bf16.mxu1 %v874_v0 }
 0x10f   :  { %599 = vmatpush1.bf16.msra.mxu1 %v772_v57 }
 0x110   :  { %600 = vmatprep.subr.bf16.mxu1 %v874_v0 }
 0x113   :  { %601 = vmatpush1.bf16.msra.mxu1 %v773_v58 }
 0x114   :  { %602 = vmatprep.subr.bf16.mxu1 %v874_v0 }
 0x117   :  { %603 = vmatpush1.bf16.msra.mxu1 %v774_v59 }
 0x118   :  { %604 = vmatprep.subr.bf16.mxu1 %v874_v0 }
 0x11b   :  { %605 = vmatpush1.bf16.msra.mxu1 %v775_v60 }
 0x11c   :  { %606 = vmatprep.subr.bf16.mxu1 %v874_v0 }
 0x11f   :  { %607 = vmatpush1.bf16.msra.mxu1 %v776_v61 }
 0x120   :  { %608 = vmatprep.subr.bf16.mxu1 %v874_v0 }
 0x123   :  { %609 = vmatpush1.bf16.msra.mxu1 %v777_v62 }
 0x124   :  { %622 = vmatprep.subr.bf16.mxu1 %v874_v0 }
 0x127   :  { %623 = vmatpush2.bf16.msra.mxu1 %v778_v9 }
 0x128   :  { %624 = vmatprep.subr.bf16.mxu1 %v874_v0 }
 0x12b   :  { %625 = vmatpush2.bf16.msra.mxu1 %v779_v10 }
 0x1c6   :  { %v709_v63 = vpop.f32.mrf.mxu1 }
 0x1c8   :  { %v710_v2 = vpop.f32.mrf.mxu1 }
 0x1c9   :  { %v711_v3 = vadd.f32 %v710_v2, %v709_v63 }
 0x1ca   :  { %v712_v4 = vpop.f32.mrf.mxu1 }
 0x1cb   :  { %v344_v5 = vadd.f32 %v711_v3, %v648_v1 }
 0x1cc   :  { %v713_v6 = vpop.f32.mrf.mxu1 }
 0x1cd   :  { %v349_v7 = vmax.f32 %v344_v5, 0.0 }
 0x1cf   :  { %v350_v8 = vpack.c.bf16 %v349_v7, %v349_v7 }
 0x1d1   :  { %492 = vmatmul.mubr.bf16.vlgmr.msra.gmra.mxu0 %v350_v8 }
 0x291   :  { %v493_v14 = vpop.f32.mrf.mxu0 }
 0x292   :  { %v494_v15 = vadd.f32 %v493_v14, %v372_v12 }
 0x293   :  { %v495_v16 = vpop.f32.mrf.mxu0 }
 0x294   :  { %v496_v17 = vadd.f32 %v495_v16, %v376_v13  ;;  %v500_v18 = vmax.f32 %v494_v15, 0.0 }
 0x295   :  { %v497_v19 = vpop.f32.mrf.mxu0 }
 0x296   :  { %v501_v20 = vmax.f32 %v496_v17, 0.0  ;;  %v502_v22 = vpack.c.bf16 %v500_v18, %v500_v18 }
 0x297   :  { %v498_v0 = vpop.f32.mrf.mxu0 }
 0x298   :  { %v503_v21 = vpack.c.bf16 %v501_v20, %v501_v20 }
 0x29a   :  { %692 = vmatprep.mubr.msk.bf16.mxu1 %vm125_vm0, %v503_v21 }
 0x29b   :  { %627 = vmatmul.mubr.bf16.vlgmr.msra.gmra.mxu1 %v502_v22 }
 0x35b   :  { %v628_v24 = vpop.f32.mrf.mxu1 }
 0x35c   :  { %v629_v25 = vadd.f32 %v681_v23, %v628_v24 }
 0x35d   :  { %v630_v26 = vpop.f32.mrf.mxu1 }
 0x35e   :  { %v634_v27 = vpack.c.bf16 %v629_v25, %v629_v25 }
 0x35f   :  { %v631_v28 = vpop.f32.mrf.mxu1 }
 0x360   :  { %635 = vst [vmem:[%s996_s9] sm:$0xf] %v634_v27 }
 0x361   :  { %v632_v29 = vpop.f32.mrf.mxu1 }
 0x362   :  { %640 = vsyncpa [#allocation3], 1 }
 0x363   :  { %641 = vsyncpa [#allocation5], 1 }
 0x364   :  { %642 = vsyncpa [#allocation8], 1 }

</bundles_post_ra>
